<compile_context>
chip_gen: v6e
topology: v6e:2x2x1
jax: 0.10.0
libtpu: 0.0.40
codegen_flags: <defaults>
</compile_context>

<pallas_src>
import jax
import jax.numpy as jnp
from jax.experimental import pallas as pl
from jax.experimental.pallas import tpu as pltpu


def cbow_gemv_kernel(s_ref, w_ref, b_ref, out_ref):
    # s_ref   : VMEM (1, E)    summed context embedding (same block every tile)
    # w_ref   : VMEM (E, tn)   contiguous pre-tiled slab of the linear weight
    # b_ref   : VMEM (1, tn)   slab of bias (f32)
    # out_ref : VMEM (1, tn)   output slab (f32), lane-dense unmasked stores
    out_ref[...] = (
        jnp.dot(s_ref[...], w_ref[...], preferred_element_type=jnp.float32)
        + b_ref[...]
    )


def prepare_linear_params(linear_weight, linear_bias, *, tn=2560,
                          weight_dtype=jnp.float32):
    """One-time prep (outside the per-call path).

    Transposes the (vocab, E) PyTorch Linear weight to (E, vocab), zero-pads
    vocab up to a multiple of tn (tn must divide the padded vocab; 2560 keeps
    vocab_pad == 10240 for vocab == 10000), and lays it out contiguously per
    vocab tile as (num_tiles, E, tn) so each kernel weight fetch is a single
    contiguous DMA.  Set weight_dtype=jnp.bfloat16 to halve HBM traffic (the
    MXU still accumulates in f32)."""
    vocab, emb_dim = linear_weight.shape
    num_tiles = pl.cdiv(vocab, tn)
    vocab_pad = tn * num_tiles
    w_t = (
        jnp.zeros((emb_dim, vocab_pad), weight_dtype)
        .at[:, :vocab]
        .set(linear_weight.T.astype(weight_dtype))
    )
    w_tiled = jnp.transpose(w_t.reshape(emb_dim, num_tiles, tn), (1, 0, 2))
    bias_row = (
        jnp.zeros((1, vocab_pad), jnp.float32)
        .at[:, :vocab]
        .set(linear_bias.astype(jnp.float32))
    )
    return w_tiled, bias_row


@jax.jit
def cbow_forward(context_ids, emb_table, w_tiled, bias_row):
    """context_ids: (C,) int32; emb_table: (vocab, E) f32;
    w_tiled: (num_tiles, E, tn) pre-tiled Linear weight (f32 or bf16);
    bias_row: (1, num_tiles*tn) f32.  Returns (1, num_tiles*tn) f32 logits;
    padded trailing columns are exactly zero."""
    num_tiles, emb_dim, tn = w_tiled.shape
    vocab_pad = num_tiles * tn

    # Gather + sum the C context embeddings once (tiny: C x E floats), then
    # match the weight dtype so the MXU gets its native input type.
    summed = jnp.take(emb_table, context_ids, axis=0).sum(axis=0, keepdims=True)
    summed = summed.astype(w_tiled.dtype)  # (1, E)

    grid_spec = pltpu.PrefetchScalarGridSpec(
        num_scalar_prefetch=0,
        grid=(num_tiles,),
        in_specs=[
            # summed context vector: same (full) block for every vocab tile
            pl.BlockSpec((1, emb_dim), lambda j: (0, 0)),
            # contiguous weight slab for vocab tile j (leading dim squeezed)
            pl.BlockSpec((None, emb_dim, tn), lambda j: (j, 0, 0)),
            # bias slab for vocab tile j
            pl.BlockSpec((1, tn), lambda j: (0, j)),
        ],
        out_specs=pl.BlockSpec((1, tn), lambda j: (0, j)),
    )

    return pl.pallas_call(
        cbow_gemv_kernel,
        out_shape=jax.ShapeDtypeStruct((1, vocab_pad), jnp.float32),
        grid_spec=grid_spec,
        compiler_params=pltpu.CompilerParams(
            dimension_semantics=("parallel",)
        ),
    )(summed, w_tiled, bias_row)


if __name__ == "__main__":
    # Shapes from the module spec: embedding_dim=128, vocab_size=10000.
    vocab_size = 10000
    embedding_dim = 128
    context_len = 8
    tn = 2560  # divides 10240 -> vocab_pad=10240, 4 parallel tiles

    key = jax.random.PRNGKey(0)
    k_emb, k_w, k_b, k_ids = jax.random.split(key, 4)

    # nn.Embedding default init: N(0, 1)
    emb_table = jax.random.normal(k_emb, (vocab_size, embedding_dim), jnp.float32)
    # nn.Linear default init: U(-1/sqrt(fan_in), 1/sqrt(fan_in))
    bound = 1.0 / (embedding_dim ** 0.5)
    linear_weight = jax.random.uniform(
        k_w, (vocab_size, embedding_dim), jnp.float32, -bound, bound
    )
    linear_bias = jax.random.uniform(k_b, (vocab_size,), jnp.float32, -bound, bound)

    context_ids = jax.random.randint(k_ids, (context_len,), 0, vocab_size, jnp.int32)

    # Pure-JAX reference (matches the PyTorch module's forward).
    summed_ref = jnp.take(emb_table, context_ids, axis=0).sum(axis=0).reshape(1, -1)
    ref = summed_ref @ linear_weight.T + linear_bias[None, :]

    # ---- Primary path: f32 weights (exact PyTorch-f32 semantics) ----------
    w_tiled, bias_row = prepare_linear_params(linear_weight, linear_bias, tn=tn)
    out_padded = jax.block_until_ready(
        cbow_forward(context_ids, emb_table, w_tiled, bias_row)
    )
    out = out_padded[:, :vocab_size]
    assert out.shape == (1, vocab_size), out.shape
    assert jnp.allclose(out, ref, rtol=1e-4, atol=1e-4), float(
        jnp.max(jnp.abs(out - ref))
    )

    # ---- Optional bandwidth-optimized path: bf16 weights (~2x HBM traffic
    # reduction); f32 accumulation on the MXU, looser tolerance. -------------
    w_tiled_bf16, bias_row_bf16 = prepare_linear_params(
        linear_weight, linear_bias, tn=tn, weight_dtype=jnp.bfloat16
    )
    out_bf16 = jax.block_until_ready(
        cbow_forward(context_ids, emb_table, w_tiled_bf16, bias_row_bf16)
    )[:, :vocab_size]
    assert jnp.allclose(out_bf16, ref, rtol=2e-2, atol=5e-2), float(
        jnp.max(jnp.abs(out_bf16 - ref))
    )

    print("KERNEL_OK")
</pallas_src>

<mosaic_0001>
module attributes {stable_mosaic.version = 11 : i64} {
  func.func @cbow_gemv_kernel(%arg0: i32, %arg1: memref<1x128xf32, #tpu.memory_space<vmem>>, %arg2: memref<1x128x2560xf32, #tpu.memory_space<vmem>>, %arg3: memref<1x2560xf32, #tpu.memory_space<vmem>>, %arg4: memref<1x2560xf32, #tpu.memory_space<vmem>>) attributes {dimension_semantics = [#tpu.dimension_semantics<parallel>], iteration_bounds = array<i64: 4>, scalar_prefetch = 0 : i64, scratch_operands = 0 : i64, tpu.core_type = #tpu.core_type<tc>, window_params = [{pipeline_mode = #tpu.pipeline_mode<synchronous>, transform_indices = @transform_0, window_bounds = array<i64: 1, 128>}, {transform_indices = @transform_1, window_bounds = array<i64: 1, 128, 2560>}, {transform_indices = @transform_2, window_bounds = array<i64: 1, 2560>}, {transform_indices = @transform_3, window_bounds = array<i64: 1, 2560>}]} {
    %c0 = arith.constant 0 : index
    %c0_0 = arith.constant 0 : index
    %0 = vector.load %arg1[%c0, %c0_0] : memref<1x128xf32, #tpu.memory_space<vmem>>, vector<1x128xf32>
    %c0_1 = arith.constant 0 : index
    %c0_2 = arith.constant 0 : index
    %c0_3 = arith.constant 0 : index
    %1 = vector.load %arg2[%c0_1, %c0_2, %c0_3] : memref<1x128x2560xf32, #tpu.memory_space<vmem>>, vector<1x128x2560xf32>
    %2 = vector.shape_cast %1 : vector<1x128x2560xf32> to vector<128x2560xf32>
    %cst = arith.constant dense<0.000000e+00> : vector<1x2560xf32>
    %3 = tpu.matmul %0, %2, %cst {dimension_numbers = #tpu.dot_dimension_numbers<[1], [0], [0], [1], [0, 0, 1, 1], [], []>} : vector<1x128xf32>, vector<128x2560xf32>, vector<1x2560xf32> -> vector<1x2560xf32>
    %c0_4 = arith.constant 0 : index
    %c0_5 = arith.constant 0 : index
    %4 = vector.load %arg3[%c0_4, %c0_5] : memref<1x2560xf32, #tpu.memory_space<vmem>>, vector<1x2560xf32>
    %5 = arith.addf %3, %4 : vector<1x2560xf32>
    %c0_6 = arith.constant 0 : index
    %c0_7 = arith.constant 0 : index
    %6 = vector.load %arg4[%c0_6, %c0_7] : memref<1x2560xf32, #tpu.memory_space<vmem>>, vector<1x2560xf32>
    tpu.vector_store %arg4[%c0_6, %c0_7], %5 {strides = array<i32>} : memref<1x2560xf32, #tpu.memory_space<vmem>>, vector<1x2560xf32>,
    return
  }
  func.func @transform_0(%arg0: i32) -> (i32, i32) {
    %c0_i32 = arith.constant 0 : i32
    %c0_i32_0 = arith.constant 0 : i32
    %c0_i32_1 = arith.constant 0 : i32
    return %c0_i32, %c0_i32_0 : i32, i32
  }
  func.func @transform_1(%arg0: i32) -> (i32, i32, i32) {
    %c0_i32 = arith.constant 0 : i32
    %c0_i32_0 = arith.constant 0 : i32
    %c0_i32_1 = arith.constant 0 : i32
    return %arg0, %c0_i32, %c0_i32_0 : i32, i32, i32
  }
  func.func @transform_2(%arg0: i32) -> (i32, i32) {
    %c0_i32 = arith.constant 0 : i32
    %c0_i32_0 = arith.constant 0 : i32
    return %c0_i32, %arg0 : i32, i32
  }
  func.func @transform_3(%arg0: i32) -> (i32, i32) {
    %c0_i32 = arith.constant 0 : i32
    %c0_i32_0 = arith.constant 0 : i32
    return %c0_i32, %arg0 : i32, i32
  }
}

</mosaic_0001>

<bundles_post_ra>
// kernel: cbow_forward.1
= control target key start
LH: loop header
LB: loop body
LE: loop exit
PB: predicated region body
PF: predicated region fallthrough
CT: control target
= control target key end

     0   :  { %8 = vsyncpa [#allocation3], 0  ;;  %s2443_s0 = inlined_call_operand.vmem [shape: f32[1,128], index: 0, kind: input, shape index: {}]   ;;  %s2444_s1 = inlined_call_operand.hbm [shape: f32[4,128,2560], index: 1, kind: input, shape index: {}]   ;;  %s2445_s2 = inlined_call_operand.hbm [shape: f32[1,10240], index: 2, kind: input, shape index: {}]   ;;  %s2446_s3 = inlined_call_operand.hbm [shape: f32[1,10240], index: 3, kind: output, shape index: {}]  }
   0x1   :  { %10 = vsyncpa [#allocation3 + $0x1], 0 }
   0x2   :  { %11 = vsyncpa [#allocation6], 0 }
   0x3   :  { %13 = vsyncpa [#allocation6 + $0x1], 0 }
   0x4   :  { %14 = vsyncpa [#allocation4], 0 }
   0x5   :  { %16 = vsyncpa [#allocation4 + $0x1], 0  ;;  %s1851_s12 = smov 0   ;;  %s1853_s13 = smov 0  }
   0x6   :  { %s1855_s14 = smov 0   ;;  %s1857_s15 = smov 0  }
   0x7 LB: > { %s1872_s16 = sadd.s32 4294967295, %s1822_s15   ;;  %s1626_s17 = sadd.s32 4294967294, %s1822_s15   ;;  %s1822_s15 = sphi %s1857_s15, %s2461_s15   ;;  %s1818_s14 = sphi %s1855_s14, %s2460_s14   ;;  %s1814_s13 = sphi %s1853_s13, %s2459_s13   ;;  %s1810_s12 = sphi %s1851_s12, %s2458_s12  }
   0x8   : > { %s1876_s18 = sadd.s32 1, %s1822_s15   ;;  %s50_s19 = sadd.s32 1, %s1818_s14 }
   0x9   : > { %s47_s20 = ssub.s32 %s1822_s15, %s1876_s18  ;;  %p57_p0 = scmp.ne.s32.totalorder %s1818_s14, %s1814_s13 }
   0xa   : > { %p48_p1 = scmp.eq.s32.totalorder %s47_s20, 0  ;;  %p58_p2 = scmp.eq.s32.totalorder %s1822_s15, 0 }
   0xb   : > { %p63_p3 = scmp.ne.s32.totalorder %s1814_s13, %s1810_s12  ;;  %p64_p4 = scmp.eq.s32.totalorder %s1872_s16, 0 }
   0xc   : > { %s1888_s21 = scalar_select %p48_p1, %s1818_s14, %s50_s19  }
   0xd   : > { %p59_p5 = por %p58_p2, %p57_p0  ;;  %p1890_p6 = por %p64_p4, %p63_p3 }
   0xe   : > { %p113_p7 = scmp.eq.s32.totalorder %s1872_s16, 3  ;;  %p119_p8 = scmp.eq.s32.totalorder %s1626_s17, 3 }
   0xf   : > { %s2449_s22 = scalar_select %p1890_p6, 1, 0 }
  0x10   : > { %p1659_p9 = scmp.lt.s32.totalorder %s1822_s15, 4  ;;  %p1896_p10 = por %p113_p7, %p57_p0 }
  0x11   : > { %p1900_p11 = por %p119_p8, %p63_p3  ;;  %s1905_s25 = sand.u32 1, %s1818_s14  }
  0x12   : > { %s2450_s23 = scalar_select %p1896_p10, 1, 0 }
  0x13   : > { %s2451_s24 = scalar_select %p1900_p11, 1, 0 }
  0x14   : > { %s1638_s26 = smul.u32 40960, %s1822_s15  ;;  %p1914_p12 = pnand %p1659_p9, %p59_p5 }
  0x15   : > { %s1637_s27 = smul.u32 2560, %s1905_s25  ;;  %s143_s7 = scalar_lea.sflag [#allocation3], %s1905_s25 }
  0x16   : > { %s1912_s30 = scalar_lea.hbm %s2444_s1, %s1638_s26  ;;  %p1700_p0 = pneg %p1914_p12 }
  0x17   : > { %s146_s5 = scalar_lea.vmem [#allocation2], %s1637_s27  ;;  %s1698_s8 = scalar_lea.hbm %s1912_s30, 40960 }
  0x18   : > { %s153_s6 = sshll.u32 %s146_s5, 4  ;;  %p1699_p13 = scmp.ne.s32.totalorder %s1912_s30, %s1698_s8  ;;  %s1918_s6 = int_to_ptr.vmem [resolvable:$true] %s153_s6 }
  0x19   : > { %s1703_s11 = scalar_lea.hbm %s2444_s1, 163840  ;;  %p1704_p3 = scmp.lt.s32.totalorder %s1912_s30, %s2444_s1 }
  0x1a   : > { %p1701_p1 = pnand %p1700_p0, %p1699_p13  ;;  %p1705_p4 = scmp.lt.s32.totalorder %s1703_s11, %s1698_s8 }
  0x1c   : > { %p1702_p2 = pneg %p1701_p1  ;;  %p1706_p5 = por %p1705_p4, %p1704_p3 }
  0x1e   : > { %p1707_p7 = pnand %p1706_p5, %p1702_p2 }
  0x20   : > { %1710 = shalt.err (!%p1707_p7)
}
  0x21   : > { %s1711_s20 = scalar_lea.vmem %s1918_s6, 40960  ;;  %s1824_s26 = smov [#allocation2]  }
  0x22   : > { %p1712_p8 = scmp.ne.s32.totalorder %s1918_s6, %s1711_s20  ;;  %s1716_s27 = sshll.u32 %s1824_s26, 4  ;;  %s1717_s27 = int_to_ptr.vmem [resolvable:$false] %s1716_s27 }
  0x23   : > { %s1718_s28 = scalar_lea.vmem %s1717_s27, 81920  ;;  %p1719_p1 = scmp.lt.s32.totalorder %s1918_s6, %s1717_s27 }
  0x24   : > { %p1714_p9 = pnand %p1712_p8, %p1700_p0  ;;  %p1720_p11 = scmp.lt.s32.totalorder %s1718_s28, %s1711_s20 }
  0x26   : > { %p1715_p13 = pneg %p1714_p9  ;;  %p1721_p10 = por %p1720_p11, %p1719_p1 }
  0x28   : > { %p1722_p3 = pnand %p1721_p10, %p1715_p13 }
  0x2a   : > { %1725 = shalt.err (!%p1722_p3)
}
  0x2b   : > { %s1825_s29 = smov 2560   ;;  %s1826_s5 = smov 160  }
  0x2c   : > { %1651 = dma.hbm_to_vmem [thread:$0]  (!%p1914_p12), %s1912_s30, 40960, %s1918_s6, %s143_s7, %s1825_s29, %s1825_s29, %s1826_s5  }
  0x2d   : > { %p1631_p2 = scmp.ge.s32.totalorder %s1822_s15, 1  ;;  %p180_p4 = scmp.lt.s32.totalorder %s1822_s15, 5 }
  0x2e   : > { %s1639_s8 = smul.u32 20, %s1905_s25  ;;  %s164_s30 = scalar_lea.sflag [#allocation6], %s1905_s25 }
  0x2f   : > { %p1950_p10 = pnand %p1631_p2, %p180_p4  ;;  %s1635_s10 = smul.u32 320, %s1822_s15 }
  0x30   : > { %s167_s20 = scalar_lea.vmem [#allocation5], %s1639_s8  ;;  %s1731_s28 = scalar_lea.hbm %s2445_s2, 1280 }
  0x31   : > { %s2453_s9 = scalar_select %p1950_p10, 1, 0 }
  0x32   : > { %s1958_s19 = scalar_lea.hbm %s2445_s2, %s1635_s10  ;;  %s175_s26 = sshll.u32 %s167_s20, 4  ;;  %s176_s26 = int_to_ptr.vmem [resolvable:$true] %s175_s26 }
  0x33   : > { %s1726_s6 = scalar_lea.hbm %s1958_s19, 320  ;;  %p1732_p8 = scmp.lt.s32.totalorder %s1958_s19, %s2445_s2 }
  0x34   : > { %p1727_p11 = scmp.ne.s32.totalorder %s1958_s19, %s1726_s6  ;;  %p1733_p9 = scmp.lt.s32.totalorder %s1731_s28, %s1726_s6 }
  0x36   : > { %p1729_p5 = pnand %p1727_p11, %p1700_p0  ;;  %p1734_p13 = por %p1733_p9, %p1732_p8 }
  0x38   : > { %p1730_p7 = pneg %p1729_p5 }
  0x3a   : > { %p1735_p1 = pnand %p1734_p13, %p1730_p7 }
  0x3c   : > { %1738 = shalt.err (!%p1735_p1)
}
  0x3d   : > { %s1739_s8 = scalar_lea.vmem %s176_s26, 320  ;;  %s1827_s25 = smov [#allocation5]  }
  0x3e   : > { %p1740_p3 = scmp.ne.s32.totalorder %s176_s26, %s1739_s8  ;;  %s1744_s10 = sshll.u32 %s1827_s25, 4  ;;  %s1745_s10 = int_to_ptr.vmem [resolvable:$false] %s1744_s10 }
  0x3f   : > { %s1746_s11 = scalar_lea.vmem %s1745_s10, 640  ;;  %p1747_p11 = scmp.lt.s32.totalorder %s176_s26, %s1745_s10 }
  0x40   : > { %p1742_p2 = pnand %p1740_p3, %p1700_p0  ;;  %p1748_p5 = scmp.lt.s32.totalorder %s1746_s11, %s1739_s8 }
  0x42   : > { %p1743_p4 = pneg %p1742_p2  ;;  %p1749_p6 = por %p1748_p5, %p1747_p11 }
  0x44   : > { %p1750_p10 = pnand %p1749_p6, %p1743_p4 }
  0x46   : > { %1753 = shalt.err (!%p1750_p10)
}
  0x47   : > { %1654 = dma.hbm_to_vmem [thread:$0]  (!%p1914_p12), %s1958_s19, 320, %s176_s26, %s164_s30  }
  0x48   : > { %p2454_p7 = scmp.ne.s32.totalorder %s2453_s9, 0 }
  0x49   : > { %s1982_s17 = sand.u32 (!%p2454_p7), 1, %s1814_s13   ;;  %p2455_p0 = scmp.ne.s32.totalorder (!%p2454_p7), %s2449_s22, 0 }
  0x4a   : > { %184 = sbr.rel (%p2454_p7) target bundleno = 472 (0x1d8), region = 32  ;;  %s187_s6 = scalar_lea.sflag (!%p2454_p7), [#allocation3], %s1982_s17 }
  0x4b   : > { %s1640_s20 = smul.u32 (!%p2454_p7), 2560, %s1982_s17 }
  0x4d   : > { %s1986_s7 = scalar_lea.vmem (!%p2454_p7), [#allocation2], %s1640_s20 }
  0x4f   : > { %1797 = dma.done.wait (%p2455_p0), %s187_s6, 40960  }
  0x50   : > { %1799 = vsyncadd (%p2455_p0), %s187_s6, 4294926336  ;;  %s1641_s4 = smul.u32 20, %s1982_s17  ;;  %s196_s9 = scalar_lea.sflag [#allocation6], %s1982_s17 }
  0x52   : > { %s1996_s19 = scalar_lea.vmem [#allocation5], %s1641_s4 }
  0x53   : > { %1801 = dma.done.wait (%p2455_p0), %s196_s9, 320  }
  0x54   : > { %1803 = vsyncadd (%p2455_p0), %s196_s9, 4294966976  ;;  %v1828_v0 = vmov 0.0   ;;  %v531_v1 = vld [vmem:[%s1986_s7 + $0x968] sm:$0xff]  ;;  %v533_v2 = vld [vmem:[%s1986_s7 + $0x978] sm:$0xff]  ;;  %s2383_s28 = scalar_lea.vmem [#allocation7], %s1641_s4  ;;  %s1636_s29 = smul.u32 320, %s1872_s16 }
  0x55   : > { %720 = vmatprep.mubr.f32.mxu0 %v1828_v0  ;;  %791 = vmatprep.mubr.f32.mxu1 %v1828_v0  ;;  %v530_v3 = vld [vmem:[%s1986_s7 + $0x960] sm:$0xff]  ;;  %v532_v4 = vld [vmem:[%s1986_s7 + $0x970] sm:$0xff]  ;;  %v511_v5 = vld [vmem:[%s1986_s7 + $0x8c8] sm:$0xff]  ;;  %s1533_s5 = sshll.u32 %s2383_s28, 4  ;;  %s1519_s11 = scalar_lea.sflag [#allocation4], %s1982_s17  ;;  %s1534_s5 = int_to_ptr.vmem [resolvable:$true] %s1533_s5 }
  0x56   : > { %656 = vmatprep.subr.mxu0 %v531_v1  ;;  %727 = vmatprep.subr.mxu1 %v533_v2  ;;  %v513_v6 = vld [vmem:[%s1986_s7 + $0x8d8] sm:$0xff]  ;;  %v510_v7 = vld [vmem:[%s1986_s7 + $0x8c0] sm:$0xff]  ;;  %v512_v8 = vld [vmem:[%s1986_s7 + $0x8d0] sm:$0xff]  ;;  %s1531_s10 = scalar_lea.hbm %s2446_s3, %s1636_s29  ;;  %s1754_s20 = scalar_lea.vmem %s1534_s5, 320 }
  0x57   : > { %657 = vmatpush1.msra.mxu0 %v530_v3  ;;  %728 = vmatpush1.msra.mxu1 %v532_v4  ;;  %v491_v9 = vld [vmem:[%s1986_s7 + $0x828] sm:$0xff]  ;;  %v493_v10 = vld [vmem:[%s1986_s7 + $0x838] sm:$0xff]  ;;  %v490_v11 = vld [vmem:[%s1986_s7 + $0x820] sm:$0xff]  ;;  %p1755_p6 = scmp.ne.s32.totalorder %s1534_s5, %s1754_s20  ;;  %p2456_p12 = scmp.ne.s32.totalorder %s2450_s23, 0 }
  0x58   : > { %658 = vmatprep.subr.mxu0 %v511_v5  ;;  %729 = vmatprep.subr.mxu1 %v513_v6  ;;  %v492_v12 = vld [vmem:[%s1986_s7 + $0x830] sm:$0xff]  ;;  %v471_v13 = vld [vmem:[%s1986_s7 + $0x788] sm:$0xff]  ;;  %v473_v14 = vld [vmem:[%s1986_s7 + $0x798] sm:$0xff]  ;;  %s1830_s6 = smov [#allocation7]  }
  0x59   : > { %659 = vmatpush1.msra.mxu0 %v510_v7  ;;  %730 = vmatpush1.msra.mxu1 %v512_v8  ;;  %v470_v15 = vld [vmem:[%s1986_s7 + $0x780] sm:$0xff]  ;;  %v472_v16 = vld [vmem:[%s1986_s7 + $0x790] sm:$0xff]  ;;  %v451_v17 = vld [vmem:[%s1986_s7 + $0x6e8] sm:$0xff]  ;;  %p1756_p10 = pnand %p1755_p6, %p2456_p12  ;;  %s1758_s16 = sshll.u32 %s1830_s6, 4  ;;  %s1759_s16 = int_to_ptr.vmem [resolvable:$false] %s1758_s16 }
  0x5a   : > { %660 = vmatprep.subr.mxu0 %v491_v9  ;;  %731 = vmatprep.subr.mxu1 %v493_v10  ;;  %v453_v18 = vld [vmem:[%s1986_s7 + $0x6f8] sm:$0xff]  ;;  %v450_v19 = vld [vmem:[%s1986_s7 + $0x6e0] sm:$0xff]  ;;  %v452_v20 = vld [vmem:[%s1986_s7 + $0x6f0] sm:$0xff]  ;;  %p1761_p9 = scmp.lt.s32.totalorder %s1534_s5, %s1759_s16 }
  0x5b   : > { %661 = vmatpush1.msra.mxu0 %v490_v11  ;;  %732 = vmatpush1.msra.mxu1 %v492_v12  ;;  %v431_v21 = vld [vmem:[%s1986_s7 + $0x648] sm:$0xff]  ;;  %v433_v22 = vld [vmem:[%s1986_s7 + $0x658] sm:$0xff]  ;;  %v430_v23 = vld [vmem:[%s1986_s7 + $0x640] sm:$0xff]  ;;  %p1757_p8 = pneg %p1756_p10 }
  0x5c   : > { %662 = vmatprep.subr.mxu0 %v471_v13  ;;  %733 = vmatprep.subr.mxu1 %v473_v14  ;;  %v432_v24 = vld [vmem:[%s1986_s7 + $0x650] sm:$0xff]  ;;  %v411_v25 = vld [vmem:[%s1986_s7 + $0x5a8] sm:$0xff]  ;;  %v413_v26 = vld [vmem:[%s1986_s7 + $0x5b8] sm:$0xff] }
  0x5d   : > { %663 = vmatpush1.msra.mxu0 %v470_v15  ;;  %734 = vmatpush1.msra.mxu1 %v472_v16  ;;  %v410_v27 = vld [vmem:[%s1986_s7 + $0x5a0] sm:$0xff]  ;;  %v412_v28 = vld [vmem:[%s1986_s7 + $0x5b0] sm:$0xff]  ;;  %v391_v29 = vld [vmem:[%s1986_s7 + $0x508] sm:$0xff] }
  0x5e   : > { %664 = vmatprep.subr.mxu0 %v451_v17  ;;  %735 = vmatprep.subr.mxu1 %v453_v18  ;;  %v393_v30 = vld [vmem:[%s1986_s7 + $0x518] sm:$0xff]  ;;  %v390_v31 = vld [vmem:[%s1986_s7 + $0x500] sm:$0xff]  ;;  %v392_v32 = vld [vmem:[%s1986_s7 + $0x510] sm:$0xff] }
  0x5f   : > { %665 = vmatpush1.msra.mxu0 %v450_v19  ;;  %736 = vmatpush1.msra.mxu1 %v452_v20  ;;  %v371_v33 = vld [vmem:[%s1986_s7 + $0x468] sm:$0xff]  ;;  %v373_v34 = vld [vmem:[%s1986_s7 + $0x478] sm:$0xff]  ;;  %v370_v35 = vld [vmem:[%s1986_s7 + $0x460] sm:$0xff] }
  0x60   : > { %666 = vmatprep.subr.mxu0 %v431_v21  ;;  %737 = vmatprep.subr.mxu1 %v433_v22  ;;  %v372_v36 = vld [vmem:[%s1986_s7 + $0x470] sm:$0xff]  ;;  %v351_v37 = vld [vmem:[%s1986_s7 + $0x3c8] sm:$0xff]  ;;  %v353_v38 = vld [vmem:[%s1986_s7 + $0x3d8] sm:$0xff] }
  0x61   : > { %667 = vmatpush1.msra.mxu0 %v430_v23  ;;  %738 = vmatpush1.msra.mxu1 %v432_v24  ;;  %v350_v39 = vld [vmem:[%s1986_s7 + $0x3c0] sm:$0xff]  ;;  %v352_v40 = vld [vmem:[%s1986_s7 + $0x3d0] sm:$0xff]  ;;  %v331_v41 = vld [vmem:[%s1986_s7 + $0x328] sm:$0xff] }
  0x62   : > { %668 = vmatprep.subr.mxu0 %v411_v25  ;;  %739 = vmatprep.subr.mxu1 %v413_v26  ;;  %v333_v42 = vld [vmem:[%s1986_s7 + $0x338] sm:$0xff]  ;;  %v330_v43 = vld [vmem:[%s1986_s7 + $0x320] sm:$0xff]  ;;  %v332_v44 = vld [vmem:[%s1986_s7 + $0x330] sm:$0xff] }
  0x63   : > { %669 = vmatpush1.msra.mxu0 %v410_v27  ;;  %740 = vmatpush1.msra.mxu1 %v412_v28  ;;  %v311_v45 = vld [vmem:[%s1986_s7 + $0x288] sm:$0xff]  ;;  %v313_v46 = vld [vmem:[%s1986_s7 + $0x298] sm:$0xff]  ;;  %v310_v47 = vld [vmem:[%s1986_s7 + $0x280] sm:$0xff] }
  0x64   : > { %670 = vmatprep.subr.mxu0 %v391_v29  ;;  %741 = vmatprep.subr.mxu1 %v393_v30  ;;  %v312_v48 = vld [vmem:[%s1986_s7 + $0x290] sm:$0xff]  ;;  %v291_v49 = vld [vmem:[%s1986_s7 + $0x1e8] sm:$0xff]  ;;  %v293_v50 = vld [vmem:[%s1986_s7 + $0x1f8] sm:$0xff] }
  0x65   : > { %671 = vmatpush1.msra.mxu0 %v390_v31  ;;  %742 = vmatpush1.msra.mxu1 %v392_v32  ;;  %v290_v51 = vld [vmem:[%s1986_s7 + $0x1e0] sm:$0xff]  ;;  %v292_v52 = vld [vmem:[%s1986_s7 + $0x1f0] sm:$0xff]  ;;  %v271_v53 = vld [vmem:[%s1986_s7 + $0x148] sm:$0xff] }
  0x66   : > { %672 = vmatprep.subr.mxu0 %v371_v33  ;;  %743 = vmatprep.subr.mxu1 %v373_v34  ;;  %v273_v54 = vld [vmem:[%s1986_s7 + $0x158] sm:$0xff]  ;;  %v270_v55 = vld [vmem:[%s1986_s7 + $0x140] sm:$0xff]  ;;  %v272_v56 = vld [vmem:[%s1986_s7 + $0x150] sm:$0xff] }
  0x67   : > { %673 = vmatpush1.msra.mxu0 %v370_v35  ;;  %744 = vmatpush1.msra.mxu1 %v372_v36  ;;  %v251_v57 = vld [vmem:[%s1986_s7 + $0xa8] sm:$0xff]  ;;  %v253_v58 = vld [vmem:[%s1986_s7 + $0xb8] sm:$0xff]  ;;  %v250_v59 = vld [vmem:[%s1986_s7 + $0xa0] sm:$0xff] }
  0x68   : > { %674 = vmatprep.subr.mxu0 %v351_v37  ;;  %745 = vmatprep.subr.mxu1 %v353_v38  ;;  %v252_v60 = vld [vmem:[%s1986_s7 + $0xb0] sm:$0xff]  ;;  %v231_v61 = vld [vmem:[%s1986_s7 + $0x8] sm:$0xff]  ;;  %v233_v62 = vld [vmem:[%s1986_s7 + $0x18] sm:$0xff] }
  0x69   : > { %675 = vmatpush1.msra.mxu0 %v350_v39  ;;  %746 = vmatpush1.msra.mxu1 %v352_v40  ;;  %v230_v63 = vld [vmem:[%s1986_s7] sm:$0xff]  ;;  %v232_v1 = vld [vmem:[%s1986_s7 + $0x10] sm:$0xff]  ;;  %v535_v3 = vld [vmem:[%s1986_s7 + $0x988] sm:$0xff] }
  0x6a   : > { %676 = vmatprep.subr.mxu0 %v331_v41  ;;  %747 = vmatprep.subr.mxu1 %v333_v42  ;;  %v2071_v2 = vld [vmem:[%s2443_s0] sm:$0x1]  ;;  %v537_v4 = vld [vmem:[%s1986_s7 + $0x998] sm:$0xff]  ;;  %v536_v6 = vld [vmem:[%s1986_s7 + $0x990] sm:$0xff] }
  0x6b   : > { %677 = vmatpush1.msra.mxu0 %v330_v43  ;;  %748 = vmatpush1.msra.mxu1 %v332_v44  ;;  %v534_v5 = vld [vmem:[%s1986_s7 + $0x980] sm:$0xff]  ;;  %v515_v7 = vld [vmem:[%s1986_s7 + $0x8e8] sm:$0xff]  ;;  %v517_v8 = vld [vmem:[%s1986_s7 + $0x8f8] sm:$0xff] }
  0x6c   : > { %678 = vmatprep.subr.mxu0 %v311_v45  ;;  %749 = vmatprep.subr.mxu1 %v313_v46  ;;  %v514_v9 = vld [vmem:[%s1986_s7 + $0x8e0] sm:$0xff]  ;;  %v516_v10 = vld [vmem:[%s1986_s7 + $0x8f0] sm:$0xff]  ;;  %v495_v11 = vld [vmem:[%s1986_s7 + $0x848] sm:$0xff] }
  0x6d   : > { %679 = vmatpush1.msra.mxu0 %v310_v47  ;;  %750 = vmatpush1.msra.mxu1 %v312_v48  ;;  %v497_v12 = vld [vmem:[%s1986_s7 + $0x858] sm:$0xff]  ;;  %v494_v13 = vld [vmem:[%s1986_s7 + $0x840] sm:$0xff]  ;;  %v496_v14 = vld [vmem:[%s1986_s7 + $0x850] sm:$0xff] }
  0x6e   : > { %680 = vmatprep.subr.mxu0 %v291_v49  ;;  %751 = vmatprep.subr.mxu1 %v293_v50  ;;  %v475_v15 = vld [vmem:[%s1986_s7 + $0x7a8] sm:$0xff]  ;;  %v477_v16 = vld [vmem:[%s1986_s7 + $0x7b8] sm:$0xff]  ;;  %v474_v17 = vld [vmem:[%s1986_s7 + $0x7a0] sm:$0xff] }
  0x6f   : > { %681 = vmatpush1.msra.mxu0 %v290_v51  ;;  %752 = vmatpush1.msra.mxu1 %v292_v52  ;;  %v476_v18 = vld [vmem:[%s1986_s7 + $0x7b0] sm:$0xff]  ;;  %v455_v19 = vld [vmem:[%s1986_s7 + $0x708] sm:$0xff]  ;;  %v457_v20 = vld [vmem:[%s1986_s7 + $0x718] sm:$0xff] }
  0x70   : > { %682 = vmatprep.subr.mxu0 %v271_v53  ;;  %753 = vmatprep.subr.mxu1 %v273_v54  ;;  %v454_v21 = vld [vmem:[%s1986_s7 + $0x700] sm:$0xff]  ;;  %v456_v22 = vld [vmem:[%s1986_s7 + $0x710] sm:$0xff]  ;;  %v435_v23 = vld [vmem:[%s1986_s7 + $0x668] sm:$0xff] }
  0x71   : > { %683 = vmatpush1.msra.mxu0 %v270_v55  ;;  %754 = vmatpush1.msra.mxu1 %v272_v56  ;;  %v437_v24 = vld [vmem:[%s1986_s7 + $0x678] sm:$0xff]  ;;  %v434_v25 = vld [vmem:[%s1986_s7 + $0x660] sm:$0xff]  ;;  %v436_v26 = vld [vmem:[%s1986_s7 + $0x670] sm:$0xff] }
  0x72   : > { %684 = vmatprep.subr.mxu0 %v251_v57  ;;  %755 = vmatprep.subr.mxu1 %v253_v58  ;;  %v415_v27 = vld [vmem:[%s1986_s7 + $0x5c8] sm:$0xff]  ;;  %v417_v28 = vld [vmem:[%s1986_s7 + $0x5d8] sm:$0xff]  ;;  %v414_v29 = vld [vmem:[%s1986_s7 + $0x5c0] sm:$0xff] }
  0x73   : > { %685 = vmatpush1.msra.mxu0 %v250_v59  ;;  %756 = vmatpush1.msra.mxu1 %v252_v60  ;;  %v416_v30 = vld [vmem:[%s1986_s7 + $0x5d0] sm:$0xff]  ;;  %v395_v31 = vld [vmem:[%s1986_s7 + $0x528] sm:$0xff]  ;;  %v397_v32 = vld [vmem:[%s1986_s7 + $0x538] sm:$0xff] }
  0x74   : > { %686 = vmatprep.subr.mxu0 %v231_v61  ;;  %757 = vmatprep.subr.mxu1 %v233_v62  ;;  %v394_v33 = vld [vmem:[%s1986_s7 + $0x520] sm:$0xff]  ;;  %v396_v34 = vld [vmem:[%s1986_s7 + $0x530] sm:$0xff]  ;;  %v375_v35 = vld [vmem:[%s1986_s7 + $0x488] sm:$0xff] }
  0x75   : > { %687 = vmatpush1.msra.mxu0 %v230_v63  ;;  %758 = vmatpush1.msra.mxu1 %v232_v1  ;;  %v377_v36 = vld [vmem:[%s1986_s7 + $0x498] sm:$0xff]  ;;  %v374_v37 = vld [vmem:[%s1986_s7 + $0x480] sm:$0xff]  ;;  %v376_v38 = vld [vmem:[%s1986_s7 + $0x490] sm:$0xff] }
  0x76   : > { %721 = vmatmul.mubr.f32.vlgmr.msra.gmra.mxu0 %v2071_v2  ;;  %792 = vmatmul.mubr.f32.vlgmr.msra.gmra.mxu1 %v2071_v2  ;;  %v355_v39 = vld [vmem:[%s1986_s7 + $0x3e8] sm:$0xff]  ;;  %v357_v40 = vld [vmem:[%s1986_s7 + $0x3f8] sm:$0xff]  ;;  %v354_v41 = vld [vmem:[%s1986_s7 + $0x3e0] sm:$0xff] }
  0x77   : > { %798 = vmatprep.subr.mxu0 %v535_v3  ;;  %869 = vmatprep.subr.mxu1 %v537_v4  ;;  %v356_v42 = vld [vmem:[%s1986_s7 + $0x3f0] sm:$0xff]  ;;  %v335_v43 = vld [vmem:[%s1986_s7 + $0x348] sm:$0xff]  ;;  %v337_v44 = vld [vmem:[%s1986_s7 + $0x358] sm:$0xff] }
  0x78   : > { %799 = vmatpush1.msra.mxu0 %v534_v5  ;;  %870 = vmatpush1.msra.mxu1 %v536_v6  ;;  %v334_v45 = vld [vmem:[%s1986_s7 + $0x340] sm:$0xff]  ;;  %v336_v46 = vld [vmem:[%s1986_s7 + $0x350] sm:$0xff]  ;;  %v315_v47 = vld [vmem:[%s1986_s7 + $0x2a8] sm:$0xff] }
  0x79   : > { %800 = vmatprep.subr.mxu0 %v515_v7  ;;  %871 = vmatprep.subr.mxu1 %v517_v8  ;;  %v317_v48 = vld [vmem:[%s1986_s7 + $0x2b8] sm:$0xff]  ;;  %v314_v49 = vld [vmem:[%s1986_s7 + $0x2a0] sm:$0xff]  ;;  %v316_v50 = vld [vmem:[%s1986_s7 + $0x2b0] sm:$0xff] }
  0x7a   : > { %801 = vmatpush1.msra.mxu0 %v514_v9  ;;  %872 = vmatpush1.msra.mxu1 %v516_v10  ;;  %v295_v51 = vld [vmem:[%s1986_s7 + $0x208] sm:$0xff]  ;;  %v297_v52 = vld [vmem:[%s1986_s7 + $0x218] sm:$0xff]  ;;  %v294_v53 = vld [vmem:[%s1986_s7 + $0x200] sm:$0xff] }
  0x7b   : > { %802 = vmatprep.subr.mxu0 %v495_v11  ;;  %873 = vmatprep.subr.mxu1 %v497_v12  ;;  %v296_v54 = vld [vmem:[%s1986_s7 + $0x210] sm:$0xff]  ;;  %v275_v55 = vld [vmem:[%s1986_s7 + $0x168] sm:$0xff]  ;;  %v277_v56 = vld [vmem:[%s1986_s7 + $0x178] sm:$0xff] }
  0x7c   : > { %803 = vmatpush1.msra.mxu0 %v494_v13  ;;  %874 = vmatpush1.msra.mxu1 %v496_v14  ;;  %v274_v57 = vld [vmem:[%s1986_s7 + $0x160] sm:$0xff]  ;;  %v276_v58 = vld [vmem:[%s1986_s7 + $0x170] sm:$0xff]  ;;  %v255_v59 = vld [vmem:[%s1986_s7 + $0xc8] sm:$0xff] }
  0x7d   : > { %804 = vmatprep.subr.mxu0 %v475_v15  ;;  %875 = vmatprep.subr.mxu1 %v477_v16  ;;  %v257_v60 = vld [vmem:[%s1986_s7 + $0xd8] sm:$0xff]  ;;  %v254_v61 = vld [vmem:[%s1986_s7 + $0xc0] sm:$0xff]  ;;  %v256_v62 = vld [vmem:[%s1986_s7 + $0xd0] sm:$0xff] }
  0x7e   : > { %805 = vmatpush1.msra.mxu0 %v474_v17  ;;  %876 = vmatpush1.msra.mxu1 %v476_v18  ;;  %v235_v63 = vld [vmem:[%s1986_s7 + $0x28] sm:$0xff]  ;;  %v237_v1 = vld [vmem:[%s1986_s7 + $0x38] sm:$0xff]  ;;  %v234_v3 = vld [vmem:[%s1986_s7 + $0x20] sm:$0xff] }
  0x7f   : > { %806 = vmatprep.subr.mxu0 %v455_v19  ;;  %877 = vmatprep.subr.mxu1 %v457_v20  ;;  %v236_v4 = vld [vmem:[%s1986_s7 + $0x30] sm:$0xff]  ;;  %v539_v5 = vld [vmem:[%s1986_s7 + $0x9a8] sm:$0xff]  ;;  %v541_v6 = vld [vmem:[%s1986_s7 + $0x9b8] sm:$0xff] }
  0x80   : > { %807 = vmatpush1.msra.mxu0 %v454_v21  ;;  %878 = vmatpush1.msra.mxu1 %v456_v22  ;;  %v538_v7 = vld [vmem:[%s1986_s7 + $0x9a0] sm:$0xff]  ;;  %v540_v8 = vld [vmem:[%s1986_s7 + $0x9b0] sm:$0xff]  ;;  %v519_v9 = vld [vmem:[%s1986_s7 + $0x908] sm:$0xff] }
  0x81   : > { %808 = vmatprep.subr.mxu0 %v435_v23  ;;  %879 = vmatprep.subr.mxu1 %v437_v24  ;;  %v521_v10 = vld [vmem:[%s1986_s7 + $0x918] sm:$0xff]  ;;  %v518_v11 = vld [vmem:[%s1986_s7 + $0x900] sm:$0xff]  ;;  %v520_v12 = vld [vmem:[%s1986_s7 + $0x910] sm:$0xff] }
  0x82   : > { %809 = vmatpush1.msra.mxu0 %v434_v25  ;;  %880 = vmatpush1.msra.mxu1 %v436_v26  ;;  %v499_v13 = vld [vmem:[%s1986_s7 + $0x868] sm:$0xff]  ;;  %v501_v14 = vld [vmem:[%s1986_s7 + $0x878] sm:$0xff]  ;;  %v498_v15 = vld [vmem:[%s1986_s7 + $0x860] sm:$0xff] }
  0x83   : > { %810 = vmatprep.subr.mxu0 %v415_v27  ;;  %881 = vmatprep.subr.mxu1 %v417_v28  ;;  %v500_v16 = vld [vmem:[%s1986_s7 + $0x870] sm:$0xff]  ;;  %v479_v17 = vld [vmem:[%s1986_s7 + $0x7c8] sm:$0xff]  ;;  %v481_v18 = vld [vmem:[%s1986_s7 + $0x7d8] sm:$0xff] }
  0x84   : > { %811 = vmatpush1.msra.mxu0 %v414_v29  ;;  %882 = vmatpush1.msra.mxu1 %v416_v30  ;;  %v478_v19 = vld [vmem:[%s1986_s7 + $0x7c0] sm:$0xff]  ;;  %v480_v20 = vld [vmem:[%s1986_s7 + $0x7d0] sm:$0xff]  ;;  %v459_v21 = vld [vmem:[%s1986_s7 + $0x728] sm:$0xff] }
  0x85   : > { %812 = vmatprep.subr.mxu0 %v395_v31  ;;  %883 = vmatprep.subr.mxu1 %v397_v32  ;;  %v461_v22 = vld [vmem:[%s1986_s7 + $0x738] sm:$0xff]  ;;  %v458_v23 = vld [vmem:[%s1986_s7 + $0x720] sm:$0xff]  ;;  %v460_v24 = vld [vmem:[%s1986_s7 + $0x730] sm:$0xff] }
  0x86   : > { %813 = vmatpush1.msra.mxu0 %v394_v33  ;;  %884 = vmatpush1.msra.mxu1 %v396_v34  ;;  %v439_v25 = vld [vmem:[%s1986_s7 + $0x688] sm:$0xff]  ;;  %v441_v26 = vld [vmem:[%s1986_s7 + $0x698] sm:$0xff]  ;;  %v438_v27 = vld [vmem:[%s1986_s7 + $0x680] sm:$0xff] }
  0x87   : > { %814 = vmatprep.subr.mxu0 %v375_v35  ;;  %885 = vmatprep.subr.mxu1 %v377_v36  ;;  %v440_v28 = vld [vmem:[%s1986_s7 + $0x690] sm:$0xff]  ;;  %v419_v29 = vld [vmem:[%s1986_s7 + $0x5e8] sm:$0xff]  ;;  %v421_v30 = vld [vmem:[%s1986_s7 + $0x5f8] sm:$0xff] }
  0x88   : > { %815 = vmatpush1.msra.mxu0 %v374_v37  ;;  %886 = vmatpush1.msra.mxu1 %v376_v38  ;;  %v418_v31 = vld [vmem:[%s1986_s7 + $0x5e0] sm:$0xff]  ;;  %v420_v32 = vld [vmem:[%s1986_s7 + $0x5f0] sm:$0xff]  ;;  %v399_v33 = vld [vmem:[%s1986_s7 + $0x548] sm:$0xff] }
  0x89   : > { %816 = vmatprep.subr.mxu0 %v355_v39  ;;  %887 = vmatprep.subr.mxu1 %v357_v40  ;;  %v401_v34 = vld [vmem:[%s1986_s7 + $0x558] sm:$0xff]  ;;  %v398_v35 = vld [vmem:[%s1986_s7 + $0x540] sm:$0xff]  ;;  %v400_v36 = vld [vmem:[%s1986_s7 + $0x550] sm:$0xff] }
  0x8a   : > { %817 = vmatpush1.msra.mxu0 %v354_v41  ;;  %888 = vmatpush1.msra.mxu1 %v356_v42  ;;  %v379_v37 = vld [vmem:[%s1986_s7 + $0x4a8] sm:$0xff]  ;;  %v381_v38 = vld [vmem:[%s1986_s7 + $0x4b8] sm:$0xff]  ;;  %v378_v39 = vld [vmem:[%s1986_s7 + $0x4a0] sm:$0xff] }
  0x8b   : > { %818 = vmatprep.subr.mxu0 %v335_v43  ;;  %889 = vmatprep.subr.mxu1 %v337_v44  ;;  %v380_v40 = vld [vmem:[%s1986_s7 + $0x4b0] sm:$0xff]  ;;  %v359_v41 = vld [vmem:[%s1986_s7 + $0x408] sm:$0xff]  ;;  %v361_v42 = vld [vmem:[%s1986_s7 + $0x418] sm:$0xff] }
  0x8c   : > { %819 = vmatpush1.msra.mxu0 %v334_v45  ;;  %890 = vmatpush1.msra.mxu1 %v336_v46  ;;  %v358_v43 = vld [vmem:[%s1986_s7 + $0x400] sm:$0xff]  ;;  %v360_v44 = vld [vmem:[%s1986_s7 + $0x410] sm:$0xff]  ;;  %v339_v45 = vld [vmem:[%s1986_s7 + $0x368] sm:$0xff] }
  0x8d   : > { %820 = vmatprep.subr.mxu0 %v315_v47  ;;  %891 = vmatprep.subr.mxu1 %v317_v48  ;;  %v341_v46 = vld [vmem:[%s1986_s7 + $0x378] sm:$0xff]  ;;  %v338_v47 = vld [vmem:[%s1986_s7 + $0x360] sm:$0xff]  ;;  %v340_v48 = vld [vmem:[%s1986_s7 + $0x370] sm:$0xff] }
  0x8e   : > { %821 = vmatpush1.msra.mxu0 %v314_v49  ;;  %892 = vmatpush1.msra.mxu1 %v316_v50  ;;  %v319_v49 = vld [vmem:[%s1986_s7 + $0x2c8] sm:$0xff]  ;;  %v321_v50 = vld [vmem:[%s1986_s7 + $0x2d8] sm:$0xff] }
  0x8f   : > { %822 = vmatprep.subr.mxu0 %v295_v51  ;;  %893 = vmatprep.subr.mxu1 %v297_v52  ;;  %v318_v51 = vld [vmem:[%s1986_s7 + $0x2c0] sm:$0xff]  ;;  %v320_v52 = vld [vmem:[%s1986_s7 + $0x2d0] sm:$0xff] }
  0x90   : > { %823 = vmatpush1.msra.mxu0 %v294_v53  ;;  %894 = vmatpush1.msra.mxu1 %v296_v54  ;;  %v299_v53 = vld [vmem:[%s1986_s7 + $0x228] sm:$0xff]  ;;  %v301_v54 = vld [vmem:[%s1986_s7 + $0x238] sm:$0xff] }
  0x91   : > { %824 = vmatprep.subr.mxu0 %v275_v55  ;;  %895 = vmatprep.subr.mxu1 %v277_v56  ;;  %v298_v55 = vld [vmem:[%s1986_s7 + $0x220] sm:$0xff]  ;;  %v300_v56 = vld [vmem:[%s1986_s7 + $0x230] sm:$0xff] }
  0x92   : > { %825 = vmatpush1.msra.mxu0 %v274_v57  ;;  %896 = vmatpush1.msra.mxu1 %v276_v58  ;;  %v279_v57 = vld [vmem:[%s1986_s7 + $0x188] sm:$0xff]  ;;  %v281_v58 = vld [vmem:[%s1986_s7 + $0x198] sm:$0xff] }
  0x93   : > { %826 = vmatprep.subr.mxu0 %v255_v59  ;;  %897 = vmatprep.subr.mxu1 %v257_v60  ;;  %v278_v59 = vld [vmem:[%s1986_s7 + $0x180] sm:$0xff]  ;;  %v280_v60 = vld [vmem:[%s1986_s7 + $0x190] sm:$0xff] }
  0x94   : > { %827 = vmatpush1.msra.mxu0 %v254_v61  ;;  %898 = vmatpush1.msra.mxu1 %v256_v62  ;;  %v259_v61 = vld [vmem:[%s1986_s7 + $0xe8] sm:$0xff]  ;;  %v261_v62 = vld [vmem:[%s1986_s7 + $0xf8] sm:$0xff] }
  0x95   : > { %828 = vmatprep.subr.mxu0 %v235_v63  ;;  %899 = vmatprep.subr.mxu1 %v237_v1  ;;  %v258_v63 = vld [vmem:[%s1986_s7 + $0xe0] sm:$0xff]  ;;  %v260_v1 = vld [vmem:[%s1986_s7 + $0xf0] sm:$0xff] }
  0x96   : > { %829 = vmatpush1.msra.mxu0 %v234_v3  ;;  %862 = vmatprep.mubr.f32.mxu0 %v1828_v0  ;;  %v239_v3 = vld [vmem:[%s1986_s7 + $0x48] sm:$0xff] }
  0x97   : > { %900 = vmatpush1.msra.mxu1 %v236_v4  ;;  %933 = vmatprep.mubr.f32.mxu1 %v1828_v0  ;;  %v241_v4 = vld [vmem:[%s1986_s7 + $0x58] sm:$0xff] }
  0x98   : > { %863 = vmatmul.mubr.f32.vlgmr.msra.gmra.mxu0 %v2071_v2  ;;  %934 = vmatmul.mubr.f32.vlgmr.msra.gmra.mxu1 %v2071_v2 }
  0x99   : > { %940 = vmatprep.subr.mxu0 %v539_v5  ;;  %1011 = vmatprep.subr.mxu1 %v541_v6  ;;  %v238_v5 = vld [vmem:[%s1986_s7 + $0x40] sm:$0xff]  ;;  %v240_v6 = vld [vmem:[%s1986_s7 + $0x50] sm:$0xff] }
  0x9a   : > { %941 = vmatpush1.msra.mxu0 %v538_v7  ;;  %1012 = vmatpush1.msra.mxu1 %v540_v8  ;;  %v543_v7 = vld [vmem:[%s1986_s7 + $0x9c8] sm:$0xff]  ;;  %v545_v8 = vld [vmem:[%s1986_s7 + $0x9d8] sm:$0xff] }
  0x9b   : > { %942 = vmatprep.subr.mxu0 %v519_v9  ;;  %1013 = vmatprep.subr.mxu1 %v521_v10  ;;  %v542_v9 = vld [vmem:[%s1986_s7 + $0x9c0] sm:$0xff]  ;;  %v544_v10 = vld [vmem:[%s1986_s7 + $0x9d0] sm:$0xff] }
  0x9c   : > { %943 = vmatpush1.msra.mxu0 %v518_v11  ;;  %1014 = vmatpush1.msra.mxu1 %v520_v12  ;;  %v523_v11 = vld [vmem:[%s1986_s7 + $0x928] sm:$0xff]  ;;  %v525_v12 = vld [vmem:[%s1986_s7 + $0x938] sm:$0xff] }
  0x9d   : > { %944 = vmatprep.subr.mxu0 %v499_v13  ;;  %1015 = vmatprep.subr.mxu1 %v501_v14  ;;  %v522_v13 = vld [vmem:[%s1986_s7 + $0x920] sm:$0xff]  ;;  %v524_v14 = vld [vmem:[%s1986_s7 + $0x930] sm:$0xff] }
  0x9e   : > { %945 = vmatpush1.msra.mxu0 %v498_v15  ;;  %1016 = vmatpush1.msra.mxu1 %v500_v16  ;;  %v503_v15 = vld [vmem:[%s1986_s7 + $0x888] sm:$0xff]  ;;  %v505_v16 = vld [vmem:[%s1986_s7 + $0x898] sm:$0xff] }
  0x9f   : > { %946 = vmatprep.subr.mxu0 %v479_v17  ;;  %1017 = vmatprep.subr.mxu1 %v481_v18  ;;  %v502_v17 = vld [vmem:[%s1986_s7 + $0x880] sm:$0xff]  ;;  %v504_v18 = vld [vmem:[%s1986_s7 + $0x890] sm:$0xff] }
  0xa0   : > { %947 = vmatpush1.msra.mxu0 %v478_v19  ;;  %1018 = vmatpush1.msra.mxu1 %v480_v20  ;;  %v483_v19 = vld [vmem:[%s1986_s7 + $0x7e8] sm:$0xff]  ;;  %v485_v20 = vld [vmem:[%s1986_s7 + $0x7f8] sm:$0xff] }
  0xa1   : > { %948 = vmatprep.subr.mxu0 %v459_v21  ;;  %1019 = vmatprep.subr.mxu1 %v461_v22  ;;  %v482_v21 = vld [vmem:[%s1986_s7 + $0x7e0] sm:$0xff]  ;;  %v484_v22 = vld [vmem:[%s1986_s7 + $0x7f0] sm:$0xff] }
  0xa2   : > { %949 = vmatpush1.msra.mxu0 %v458_v23  ;;  %1020 = vmatpush1.msra.mxu1 %v460_v24  ;;  %v463_v23 = vld [vmem:[%s1986_s7 + $0x748] sm:$0xff]  ;;  %v465_v24 = vld [vmem:[%s1986_s7 + $0x758] sm:$0xff] }
  0xa3   : > { %950 = vmatprep.subr.mxu0 %v439_v25  ;;  %1021 = vmatprep.subr.mxu1 %v441_v26  ;;  %v462_v25 = vld [vmem:[%s1986_s7 + $0x740] sm:$0xff]  ;;  %v464_v26 = vld [vmem:[%s1986_s7 + $0x750] sm:$0xff] }
  0xa4   : > { %951 = vmatpush1.msra.mxu0 %v438_v27  ;;  %1022 = vmatpush1.msra.mxu1 %v440_v28  ;;  %v443_v27 = vld [vmem:[%s1986_s7 + $0x6a8] sm:$0xff]  ;;  %v445_v28 = vld [vmem:[%s1986_s7 + $0x6b8] sm:$0xff] }
  0xa5   : > { %952 = vmatprep.subr.mxu0 %v419_v29  ;;  %1023 = vmatprep.subr.mxu1 %v421_v30  ;;  %v442_v29 = vld [vmem:[%s1986_s7 + $0x6a0] sm:$0xff]  ;;  %v444_v30 = vld [vmem:[%s1986_s7 + $0x6b0] sm:$0xff] }
  0xa6   : > { %953 = vmatpush1.msra.mxu0 %v418_v31  ;;  %1024 = vmatpush1.msra.mxu1 %v420_v32  ;;  %v423_v31 = vld [vmem:[%s1986_s7 + $0x608] sm:$0xff]  ;;  %v425_v32 = vld [vmem:[%s1986_s7 + $0x618] sm:$0xff] }
  0xa7   : > { %954 = vmatprep.subr.mxu0 %v399_v33  ;;  %1025 = vmatprep.subr.mxu1 %v401_v34  ;;  %v422_v33 = vld [vmem:[%s1986_s7 + $0x600] sm:$0xff]  ;;  %v424_v34 = vld [vmem:[%s1986_s7 + $0x610] sm:$0xff] }
  0xa8   : > { %955 = vmatpush1.msra.mxu0 %v398_v35  ;;  %1026 = vmatpush1.msra.mxu1 %v400_v36  ;;  %v403_v35 = vld [vmem:[%s1986_s7 + $0x568] sm:$0xff]  ;;  %v405_v36 = vld [vmem:[%s1986_s7 + $0x578] sm:$0xff] }
  0xa9   : > { %956 = vmatprep.subr.mxu0 %v379_v37  ;;  %1027 = vmatprep.subr.mxu1 %v381_v38  ;;  %v402_v37 = vld [vmem:[%s1986_s7 + $0x560] sm:$0xff]  ;;  %v404_v38 = vld [vmem:[%s1986_s7 + $0x570] sm:$0xff] }
  0xaa   : > { %957 = vmatpush1.msra.mxu0 %v378_v39  ;;  %1028 = vmatpush1.msra.mxu1 %v380_v40  ;;  %v383_v39 = vld [vmem:[%s1986_s7 + $0x4c8] sm:$0xff]  ;;  %v385_v40 = vld [vmem:[%s1986_s7 + $0x4d8] sm:$0xff] }
  0xab   : > { %958 = vmatprep.subr.mxu0 %v359_v41  ;;  %1029 = vmatprep.subr.mxu1 %v361_v42  ;;  %v382_v41 = vld [vmem:[%s1986_s7 + $0x4c0] sm:$0xff]  ;;  %v384_v42 = vld [vmem:[%s1986_s7 + $0x4d0] sm:$0xff] }
  0xac   : > { %959 = vmatpush1.msra.mxu0 %v358_v43  ;;  %1030 = vmatpush1.msra.mxu1 %v360_v44  ;;  %v363_v43 = vld [vmem:[%s1986_s7 + $0x428] sm:$0xff]  ;;  %v365_v44 = vld [vmem:[%s1986_s7 + $0x438] sm:$0xff] }
  0xad   : > { %960 = vmatprep.subr.mxu0 %v339_v45  ;;  %1031 = vmatprep.subr.mxu1 %v341_v46  ;;  %v362_v45 = vld [vmem:[%s1986_s7 + $0x420] sm:$0xff]  ;;  %v364_v46 = vld [vmem:[%s1986_s7 + $0x430] sm:$0xff] }
  0xae   : > { %961 = vmatpush1.msra.mxu0 %v338_v47  ;;  %1032 = vmatpush1.msra.mxu1 %v340_v48  ;;  %v343_v47 = vld [vmem:[%s1986_s7 + $0x388] sm:$0xff]  ;;  %v345_v48 = vld [vmem:[%s1986_s7 + $0x398] sm:$0xff] }
  0xaf   : > { %962 = vmatprep.subr.mxu0 %v319_v49  ;;  %1033 = vmatprep.subr.mxu1 %v321_v50  ;;  %v342_v49 = vld [vmem:[%s1986_s7 + $0x380] sm:$0xff]  ;;  %v344_v50 = vld [vmem:[%s1986_s7 + $0x390] sm:$0xff] }
  0xb0   : > { %963 = vmatpush1.msra.mxu0 %v318_v51  ;;  %1034 = vmatpush1.msra.mxu1 %v320_v52  ;;  %v323_v51 = vld [vmem:[%s1986_s7 + $0x2e8] sm:$0xff]  ;;  %v325_v52 = vld [vmem:[%s1986_s7 + $0x2f8] sm:$0xff] }
  0xb1   : > { %964 = vmatprep.subr.mxu0 %v299_v53  ;;  %1035 = vmatprep.subr.mxu1 %v301_v54  ;;  %v322_v53 = vld [vmem:[%s1986_s7 + $0x2e0] sm:$0xff]  ;;  %v324_v54 = vld [vmem:[%s1986_s7 + $0x2f0] sm:$0xff] }
  0xb2   : > { %965 = vmatpush1.msra.mxu0 %v298_v55  ;;  %1036 = vmatpush1.msra.mxu1 %v300_v56  ;;  %v303_v55 = vld [vmem:[%s1986_s7 + $0x248] sm:$0xff]  ;;  %v305_v56 = vld [vmem:[%s1986_s7 + $0x258] sm:$0xff] }
  0xb3   : > { %966 = vmatprep.subr.mxu0 %v279_v57  ;;  %1037 = vmatprep.subr.mxu1 %v281_v58  ;;  %v302_v57 = vld [vmem:[%s1986_s7 + $0x240] sm:$0xff]  ;;  %v304_v58 = vld [vmem:[%s1986_s7 + $0x250] sm:$0xff] }
  0xb4   : > { %967 = vmatpush1.msra.mxu0 %v278_v59  ;;  %1038 = vmatpush1.msra.mxu1 %v280_v60  ;;  %v283_v59 = vld [vmem:[%s1986_s7 + $0x1a8] sm:$0xff]  ;;  %v285_v60 = vld [vmem:[%s1986_s7 + $0x1b8] sm:$0xff] }
  0xb5   : > { %968 = vmatprep.subr.mxu0 %v259_v61  ;;  %1039 = vmatprep.subr.mxu1 %v261_v62  ;;  %v282_v61 = vld [vmem:[%s1986_s7 + $0x1a0] sm:$0xff]  ;;  %v284_v62 = vld [vmem:[%s1986_s7 + $0x1b0] sm:$0xff] }
  0xb6   : > { %969 = vmatpush1.msra.mxu0 %v258_v63  ;;  %1040 = vmatpush1.msra.mxu1 %v260_v1  ;;  %v263_v63 = vld [vmem:[%s1986_s7 + $0x108] sm:$0xff]  ;;  %v265_v1 = vld [vmem:[%s1986_s7 + $0x118] sm:$0xff] }
  0xb7   : > { %970 = vmatprep.subr.mxu0 %v239_v3  ;;  %1041 = vmatprep.subr.mxu1 %v241_v4  ;;  %v262_v3 = vld [vmem:[%s1986_s7 + $0x100] sm:$0xff]  ;;  %v264_v4 = vld [vmem:[%s1986_s7 + $0x110] sm:$0xff] }
  0xb8   : > { %971 = vmatpush1.msra.mxu0 %v238_v5  ;;  %1004 = vmatprep.mubr.f32.mxu0 %v1828_v0  ;;  %v243_v5 = vld [vmem:[%s1986_s7 + $0x68] sm:$0xff] }
  0xb9   : > { %1042 = vmatpush1.msra.mxu1 %v240_v6  ;;  %1075 = vmatprep.mubr.f32.mxu1 %v1828_v0  ;;  %v245_v6 = vld [vmem:[%s1986_s7 + $0x78] sm:$0xff] }
  0xba   : > { %1005 = vmatmul.mubr.f32.vlgmr.msra.gmra.mxu0 %v2071_v2  ;;  %1076 = vmatmul.mubr.f32.vlgmr.msra.gmra.mxu1 %v2071_v2 }
  0xbb   : > { %1082 = vmatprep.subr.mxu0 %v543_v7  ;;  %1153 = vmatprep.subr.mxu1 %v545_v8  ;;  %v242_v7 = vld [vmem:[%s1986_s7 + $0x60] sm:$0xff]  ;;  %v244_v8 = vld [vmem:[%s1986_s7 + $0x70] sm:$0xff] }
  0xbc   : > { %1083 = vmatpush1.msra.mxu0 %v542_v9  ;;  %1154 = vmatpush1.msra.mxu1 %v544_v10  ;;  %v547_v9 = vld [vmem:[%s1986_s7 + $0x9e8] sm:$0xff]  ;;  %v549_v10 = vld [vmem:[%s1986_s7 + $0x9f8] sm:$0xff] }
  0xbd   : > { %1084 = vmatprep.subr.mxu0 %v523_v11  ;;  %1155 = vmatprep.subr.mxu1 %v525_v12  ;;  %v546_v11 = vld [vmem:[%s1986_s7 + $0x9e0] sm:$0xff]  ;;  %v548_v12 = vld [vmem:[%s1986_s7 + $0x9f0] sm:$0xff] }
  0xbe   : > { %1085 = vmatpush1.msra.mxu0 %v522_v13  ;;  %1156 = vmatpush1.msra.mxu1 %v524_v14  ;;  %v527_v13 = vld [vmem:[%s1986_s7 + $0x948] sm:$0xff]  ;;  %v529_v14 = vld [vmem:[%s1986_s7 + $0x958] sm:$0xff] }
  0xbf   : > { %1086 = vmatprep.subr.mxu0 %v503_v15  ;;  %1157 = vmatprep.subr.mxu1 %v505_v16  ;;  %v526_v15 = vld [vmem:[%s1986_s7 + $0x940] sm:$0xff]  ;;  %v528_v16 = vld [vmem:[%s1986_s7 + $0x950] sm:$0xff] }
  0xc0   : > { %1087 = vmatpush1.msra.mxu0 %v502_v17  ;;  %1158 = vmatpush1.msra.mxu1 %v504_v18  ;;  %v507_v17 = vld [vmem:[%s1986_s7 + $0x8a8] sm:$0xff]  ;;  %v509_v18 = vld [vmem:[%s1986_s7 + $0x8b8] sm:$0xff] }
  0xc1   : > { %1088 = vmatprep.subr.mxu0 %v483_v19  ;;  %1159 = vmatprep.subr.mxu1 %v485_v20  ;;  %v506_v19 = vld [vmem:[%s1986_s7 + $0x8a0] sm:$0xff]  ;;  %v487_v20 = vld [vmem:[%s1986_s7 + $0x808] sm:$0xff] }
  0xc2   : > { %1089 = vmatpush1.msra.mxu0 %v482_v21  ;;  %1160 = vmatpush1.msra.mxu1 %v484_v22  ;;  %v489_v21 = vld [vmem:[%s1986_s7 + $0x818] sm:$0xff]  ;;  %v486_v22 = vld [vmem:[%s1986_s7 + $0x800] sm:$0xff] }
  0xc3   : > { %1090 = vmatprep.subr.mxu0 %v463_v23  ;;  %1161 = vmatprep.subr.mxu1 %v465_v24  ;;  %v488_v23 = vld [vmem:[%s1986_s7 + $0x810] sm:$0xff]  ;;  %v467_v24 = vld [vmem:[%s1986_s7 + $0x768] sm:$0xff] }
  0xc4   : > { %1091 = vmatpush1.msra.mxu0 %v462_v25  ;;  %1162 = vmatpush1.msra.mxu1 %v464_v26  ;;  %v469_v25 = vld [vmem:[%s1986_s7 + $0x778] sm:$0xff]  ;;  %v466_v26 = vld [vmem:[%s1986_s7 + $0x760] sm:$0xff] }
  0xc5   : > { %1092 = vmatprep.subr.mxu0 %v443_v27  ;;  %1163 = vmatprep.subr.mxu1 %v445_v28  ;;  %v468_v27 = vld [vmem:[%s1986_s7 + $0x770] sm:$0xff]  ;;  %v447_v28 = vld [vmem:[%s1986_s7 + $0x6c8] sm:$0xff] }
  0xc6   : > { %1093 = vmatpush1.msra.mxu0 %v442_v29  ;;  %1164 = vmatpush1.msra.mxu1 %v444_v30  ;;  %v449_v29 = vld [vmem:[%s1986_s7 + $0x6d8] sm:$0xff]  ;;  %v446_v30 = vld [vmem:[%s1986_s7 + $0x6c0] sm:$0xff] }
  0xc7   : > { %1094 = vmatprep.subr.mxu0 %v423_v31  ;;  %1165 = vmatprep.subr.mxu1 %v425_v32  ;;  %v448_v31 = vld [vmem:[%s1986_s7 + $0x6d0] sm:$0xff]  ;;  %v427_v32 = vld [vmem:[%s1986_s7 + $0x628] sm:$0xff] }
  0xc8   : > { %1095 = vmatpush1.msra.mxu0 %v422_v33  ;;  %1166 = vmatpush1.msra.mxu1 %v424_v34  ;;  %v429_v33 = vld [vmem:[%s1986_s7 + $0x638] sm:$0xff]  ;;  %v426_v34 = vld [vmem:[%s1986_s7 + $0x620] sm:$0xff] }
  0xc9   : > { %1096 = vmatprep.subr.mxu0 %v403_v35  ;;  %1167 = vmatprep.subr.mxu1 %v405_v36  ;;  %v428_v35 = vld [vmem:[%s1986_s7 + $0x630] sm:$0xff]  ;;  %v407_v36 = vld [vmem:[%s1986_s7 + $0x588] sm:$0xff] }
  0xca   : > { %1097 = vmatpush1.msra.mxu0 %v402_v37  ;;  %1168 = vmatpush1.msra.mxu1 %v404_v38  ;;  %v409_v37 = vld [vmem:[%s1986_s7 + $0x598] sm:$0xff]  ;;  %v406_v38 = vld [vmem:[%s1986_s7 + $0x580] sm:$0xff] }
  0xcb   : > { %1098 = vmatprep.subr.mxu0 %v383_v39  ;;  %1169 = vmatprep.subr.mxu1 %v385_v40  ;;  %v408_v39 = vld [vmem:[%s1986_s7 + $0x590] sm:$0xff]  ;;  %v387_v40 = vld [vmem:[%s1986_s7 + $0x4e8] sm:$0xff] }
  0xcc   : > { %1099 = vmatpush1.msra.mxu0 %v382_v41  ;;  %1170 = vmatpush1.msra.mxu1 %v384_v42  ;;  %v389_v41 = vld [vmem:[%s1986_s7 + $0x4f8] sm:$0xff]  ;;  %v386_v42 = vld [vmem:[%s1986_s7 + $0x4e0] sm:$0xff] }
  0xcd   : > { %1100 = vmatprep.subr.mxu0 %v363_v43  ;;  %1171 = vmatprep.subr.mxu1 %v365_v44  ;;  %v388_v43 = vld [vmem:[%s1986_s7 + $0x4f0] sm:$0xff]  ;;  %v367_v44 = vld [vmem:[%s1986_s7 + $0x448] sm:$0xff] }
  0xce   : > { %1101 = vmatpush1.msra.mxu0 %v362_v45  ;;  %1172 = vmatpush1.msra.mxu1 %v364_v46  ;;  %v369_v45 = vld [vmem:[%s1986_s7 + $0x458] sm:$0xff]  ;;  %v366_v46 = vld [vmem:[%s1986_s7 + $0x440] sm:$0xff] }
  0xcf   : > { %1102 = vmatprep.subr.mxu0 %v343_v47  ;;  %1173 = vmatprep.subr.mxu1 %v345_v48  ;;  %v368_v47 = vld [vmem:[%s1986_s7 + $0x450] sm:$0xff]  ;;  %v347_v48 = vld [vmem:[%s1986_s7 + $0x3a8] sm:$0xff] }
  0xd0   : > { %1103 = vmatpush1.msra.mxu0 %v342_v49  ;;  %1174 = vmatpush1.msra.mxu1 %v344_v50  ;;  %v349_v49 = vld [vmem:[%s1986_s7 + $0x3b8] sm:$0xff]  ;;  %v346_v50 = vld [vmem:[%s1986_s7 + $0x3a0] sm:$0xff] }
  0xd1   : > { %1104 = vmatprep.subr.mxu0 %v323_v51  ;;  %1175 = vmatprep.subr.mxu1 %v325_v52  ;;  %v348_v51 = vld [vmem:[%s1986_s7 + $0x3b0] sm:$0xff]  ;;  %v327_v52 = vld [vmem:[%s1986_s7 + $0x308] sm:$0xff] }
  0xd2   : > { %1105 = vmatpush1.msra.mxu0 %v322_v53  ;;  %1176 = vmatpush1.msra.mxu1 %v324_v54  ;;  %v329_v53 = vld [vmem:[%s1986_s7 + $0x318] sm:$0xff]  ;;  %v326_v54 = vld [vmem:[%s1986_s7 + $0x300] sm:$0xff] }
  0xd3   : > { %1106 = vmatprep.subr.mxu0 %v303_v55  ;;  %1177 = vmatprep.subr.mxu1 %v305_v56  ;;  %v328_v55 = vld [vmem:[%s1986_s7 + $0x310] sm:$0xff]  ;;  %v307_v56 = vld [vmem:[%s1986_s7 + $0x268] sm:$0xff] }
  0xd4   : > { %1107 = vmatpush1.msra.mxu0 %v302_v57  ;;  %1178 = vmatpush1.msra.mxu1 %v304_v58  ;;  %v309_v57 = vld [vmem:[%s1986_s7 + $0x278] sm:$0xff]  ;;  %v306_v58 = vld [vmem:[%s1986_s7 + $0x260] sm:$0xff] }
  0xd5   : > { %1108 = vmatprep.subr.mxu0 %v283_v59  ;;  %1179 = vmatprep.subr.mxu1 %v285_v60  ;;  %v308_v59 = vld [vmem:[%s1986_s7 + $0x270] sm:$0xff]  ;;  %v287_v60 = vld [vmem:[%s1986_s7 + $0x1c8] sm:$0xff] }
  0xd6   : > { %1109 = vmatpush1.msra.mxu0 %v282_v61  ;;  %1180 = vmatpush1.msra.mxu1 %v284_v62  ;;  %v289_v61 = vld [vmem:[%s1986_s7 + $0x1d8] sm:$0xff]  ;;  %v286_v62 = vld [vmem:[%s1986_s7 + $0x1c0] sm:$0xff] }
  0xd7   : > { %1110 = vmatprep.subr.mxu0 %v263_v63  ;;  %1181 = vmatprep.subr.mxu1 %v265_v1  ;;  %v288_v63 = vld [vmem:[%s1986_s7 + $0x1d0] sm:$0xff]  ;;  %v267_v1 = vld [vmem:[%s1986_s7 + $0x128] sm:$0xff] }
  0xd8   : > { %1111 = vmatpush1.msra.mxu0 %v262_v3  ;;  %1182 = vmatpush1.msra.mxu1 %v264_v4  ;;  %v269_v3 = vld [vmem:[%s1986_s7 + $0x138] sm:$0xff]  ;;  %v266_v4 = vld [vmem:[%s1986_s7 + $0x120] sm:$0xff] }
  0xd9   : > { %1112 = vmatprep.subr.mxu0 %v243_v5  ;;  %1183 = vmatprep.subr.mxu1 %v245_v6  ;;  %v268_v5 = vld [vmem:[%s1986_s7 + $0x130] sm:$0xff]  ;;  %v247_v6 = vld [vmem:[%s1986_s7 + $0x88] sm:$0xff] }
  0xda   : > { %1113 = vmatpush1.msra.mxu0 %v242_v7  ;;  %1146 = vmatprep.mubr.f32.mxu0 %v1828_v0  ;;  %v249_v7 = vld [vmem:[%s1986_s7 + $0x98] sm:$0xff] }
  0xdb   : > { %1184 = vmatpush1.msra.mxu1 %v244_v8  ;;  %1217 = vmatprep.mubr.f32.mxu1 %v1828_v0  ;;  %v246_v8 = vld [vmem:[%s1986_s7 + $0x80] sm:$0xff] }
  0xdc   : > { %1147 = vmatmul.mubr.f32.vlgmr.msra.gmra.mxu0 %v2071_v2  ;;  %1218 = vmatmul.mubr.f32.vlgmr.msra.gmra.mxu1 %v2071_v2  ;;  %v508_v2 = vld [vmem:[%s1986_s7 + $0x8b0] sm:$0xff] }
  0xdd   : > { %1224 = vmatprep.subr.mxu0 %v547_v9  ;;  %1295 = vmatprep.subr.mxu1 %v549_v10  ;;  %v248_v9 = vld [vmem:[%s1986_s7 + $0x90] sm:$0xff]  ;;  %v1697_v10 = vld [vmem:[%s2443_s0] sm:$0x1]  ;;  %s1760_s7 = scalar_lea.vmem %s1759_s16, 640 }
  0xde   : > { %1225 = vmatpush1.msra.mxu0 %v546_v11  ;;  %1296 = vmatpush1.msra.mxu1 %v548_v12  ;;  %v556_v11 = vlaneseq  ;;  %p1762_p13 = scmp.lt.s32.totalorder %s1760_s7, %s1754_s20 }
  0xdf   : > { %1226 = vmatprep.subr.mxu0 %v527_v13  ;;  %1297 = vmatprep.subr.mxu1 %v529_v14 }
  0xe0   : > { %1227 = vmatpush1.msra.mxu0 %v526_v15  ;;  %1298 = vmatpush1.msra.mxu1 %v528_v16  ;;  %v2349_v12 = vshrl.u32 %v556_v11, 7  ;;  %v550_v16 = vld [vmem:[%s1996_s19] sm:$0xff]  ;;  %vm1515_vm0 = vcmp.lt.s32.totalorder %v556_v11, 512  ;;  %p1763_p1 = por %p1762_p13, %p1761_p9 }
  0xe1   : > { %1228 = vmatprep.subr.mxu0 %v507_v17  ;;  %1299 = vmatprep.subr.mxu1 %v509_v18 }
  0xe2   : > { %1229 = vmatpush1.msra.mxu0 %v506_v19  ;;  %1300 = vmatpush1.msra.mxu1 %v508_v2  ;;  %v2352_v13 = vsub.s32 0, %v2349_v12  ;;  %v2355_v14 = vsub.s32 2, %v2349_v12  ;;  %v2358_v15 = vsub.s32 1, %v2349_v12  ;;  %v1829_v19 = vmov 1966171168   ;;  %p1764_p3 = pnand %p1763_p1, %p1757_p8 }
  0xe3   : > { %1230 = vmatprep.subr.mxu0 %v487_v20  ;;  %1301 = vmatprep.subr.mxu1 %v489_v21  ;;  %v1391_v2 = vunpack.c.l.s4 %v1829_v19 }
  0xe4   : > { %1231 = vmatpush1.msra.mxu0 %v486_v22  ;;  %1302 = vmatpush1.msra.mxu1 %v488_v23  ;;  %v559_v20 = vrot.slane %v550_v16, %v2352_v13  ;;  %v567_v21 = vrot.slane %v550_v16, %v2355_v14  ;;  %v563_v22 = vrot.slane %v550_v16, %v2358_v15 }
  0xe5   : > { %1232 = vmatprep.subr.mxu0 %v467_v24  ;;  %1303 = vmatprep.subr.mxu1 %v469_v25 }
  0xe6   : > { %1233 = vmatpush1.msra.mxu0 %v466_v26  ;;  %1304 = vmatpush1.msra.mxu1 %v468_v27  ;;  %v574_v26 = vsub.s32 4, %v2349_v12  ;;  %v582_v27 = vsub.s32 6, %v2349_v12 }
  0xe7   : > { %1234 = vmatprep.subr.mxu0 %v447_v28  ;;  %1305 = vmatprep.subr.mxu1 %v449_v29  ;;  %v1392_v28 = vunpack.c.0.s8 %v1391_v2  ;;  %v578_v29 = vsub.s32 5, %v2349_v12 }
  0xe8   : > { %1235 = vmatpush1.msra.mxu0 %v446_v30  ;;  %1306 = vmatpush1.msra.mxu1 %v448_v31  ;;  %v586_v30 = vsub.s32 7, %v2349_v12 }
  0xe9   : > { %1236 = vmatprep.subr.mxu0 %v427_v32  ;;  %1307 = vmatprep.subr.mxu1 %v429_v33 }
  0xea   : > { %1237 = vmatpush1.msra.mxu0 %v426_v34  ;;  %1308 = vmatpush1.msra.mxu1 %v428_v35  ;;  %v575_v35 = vrot.slane %v550_v16, %v574_v26 }
  0xeb   : > { %1238 = vmatprep.subr.mxu0 %v407_v36  ;;  %1309 = vmatprep.subr.mxu1 %v409_v37  ;;  %v583_v36 = vrot.slane %v550_v16, %v582_v27  ;;  %v2373_v37 = vsub.s32 %v1392_v28, %v2349_v12 }
  0xec   : > { %1239 = vmatpush1.msra.mxu0 %v406_v38  ;;  %1310 = vmatpush1.msra.mxu1 %v408_v39 }
  0xed   : > { %1240 = vmatprep.subr.mxu0 %v387_v40  ;;  %1311 = vmatprep.subr.mxu1 %v389_v41  ;;  %v579_v40 = vrot.slane %v550_v16, %v578_v29  ;;  %v587_v41 = vrot.slane %v550_v16, %v586_v30 }
  0xee   : > { %1241 = vmatpush1.msra.mxu0 %v386_v42  ;;  %1312 = vmatpush1.msra.mxu1 %v388_v43 }
  0xef   : > { %1242 = vmatprep.subr.mxu0 %v367_v44  ;;  %1313 = vmatprep.subr.mxu1 %v369_v45 }
  0xf0   : > { %1243 = vmatpush1.msra.mxu0 %v366_v46  ;;  %1314 = vmatpush1.msra.mxu1 %v368_v47 }
  0xf1   : > { %1244 = vmatprep.subr.mxu0 %v347_v48  ;;  %1315 = vmatprep.subr.mxu1 %v349_v49 }
  0xf2   : > { %1245 = vmatpush1.msra.mxu0 %v346_v50  ;;  %1316 = vmatpush1.msra.mxu1 %v348_v51 }
  0xf3   : > { %1246 = vmatprep.subr.mxu0 %v327_v52  ;;  %1317 = vmatprep.subr.mxu1 %v329_v53 }
  0xf4   : > { %1247 = vmatpush1.msra.mxu0 %v326_v54  ;;  %1318 = vmatpush1.msra.mxu1 %v328_v55 }
  0xf5   : > { %1248 = vmatprep.subr.mxu0 %v307_v56  ;;  %1319 = vmatprep.subr.mxu1 %v309_v57 }
  0xf6   : > { %1249 = vmatpush1.msra.mxu0 %v306_v58  ;;  %1320 = vmatpush1.msra.mxu1 %v308_v59 }
  0xf7   : > { %1250 = vmatprep.subr.mxu0 %v287_v60  ;;  %1321 = vmatprep.subr.mxu1 %v289_v61  ;;  %v551_v61 = vld [vmem:[%s1996_s19 + $0x8] sm:$0xff] }
  0xf8   : > { %1251 = vmatpush1.msra.mxu0 %v286_v62  ;;  %1322 = vmatpush1.msra.mxu1 %v288_v63  ;;  %v611_v2 = vrot.slane %v551_v61, %v578_v29 }
  0xf9   : > { %1252 = vmatprep.subr.mxu0 %v267_v1  ;;  %1323 = vmatprep.subr.mxu1 %v269_v3  ;;  %v591_v1 = vrot.slane %v551_v61, %v2352_v13  ;;  %v599_v3 = vrot.slane %v551_v61, %v2355_v14 }
  0xfa   : > { %1253 = vmatpush1.msra.mxu0 %v266_v4  ;;  %1324 = vmatpush1.msra.mxu1 %v268_v5  ;;  %v595_v4 = vrot.slane %v551_v61, %v2358_v15 }
  0xfb   : > { %1254 = vmatprep.subr.mxu0 %v247_v6  ;;  %1325 = vmatprep.subr.mxu1 %v249_v7 }
  0xfc   : > { %1255 = vmatpush1.msra.mxu0 %v246_v8  ;;  %1288 = vmatprep.mubr.f32.mxu0 %v1828_v0 }
  0xfd   : > { %1326 = vmatpush1.msra.mxu1 %v248_v9  ;;  %1359 = vmatprep.mubr.f32.mxu1 %v1828_v0  ;;  %v2361_v0 = vsub.s32 3, %v2349_v12 }
  0xfe   : > { %1289 = vmatmul.mubr.f32.vlgmr.msra.gmra.mxu0 %v1697_v10  ;;  %1360 = vmatmul.mubr.f32.vlgmr.msra.gmra.mxu1 %v1697_v10 }
  0xff   : > { %v571_v23 = vrot.slane %v550_v16, %v2361_v0  ;;  %v603_v5 = vrot.slane %v551_v61, %v2361_v0  ;;  %v607_v16 = vrot.slane %v551_v61, %v574_v26 }
 0x136   : > { %v722_v17 = vpop.f32.mrf.mxu0  ;;  %v793_v18 = vpop.f32.mrf.mxu1 }
 0x137   : > { %v723_v31 = vadd.f32 %v722_v17, %v559_v20  ;;  %v794_v32 = vadd.f32 %v793_v18, %v567_v21  ;;  %v615_v17 = vrot.slane %v551_v61, %v582_v27  ;;  %v619_v20 = vrot.slane %v551_v61, %v586_v30 }
 0x138   : > { %v724_v24 = vpop.f32.mrf.mxu0  ;;  %v795_v25 = vpop.f32.mrf.mxu1 }
 0x139   : > { %v725_v33 = vadd.f32 %v724_v24, %v563_v22  ;;  %v796_v34 = vadd.f32 %v795_v25, %v571_v23 }
 0x13b   : > { %v1386_v38 = vcombine.low %v723_v31, %v725_v33  ;;  %v1387_v39 = vcombine.low %v794_v32, %v796_v34 }
 0x13d   : > { %v1396_v48 = vrot.slane %v1386_v38, %v2373_v37  ;;  %v1403_v49 = vrot.slane %v1387_v39, %v2373_v37 }
 0x13f   : > { %v1418_v54 = vcombine.low %v1396_v48, %v1403_v49 }
 0x141   : > { %v1426_v58 = vrot.slane %v1418_v54, %v2373_v37 }
 0x158   : > { %v864_v42 = vpop.f32.mrf.mxu0  ;;  %v935_v43 = vpop.f32.mrf.mxu1 }
 0x159   : > { %v865_v44 = vadd.f32 %v864_v42, %v575_v35  ;;  %v936_v45 = vadd.f32 %v935_v43, %v583_v36 }
 0x15a   : > { %v866_v46 = vpop.f32.mrf.mxu0  ;;  %v937_v47 = vpop.f32.mrf.mxu1 }
 0x15b   : > { %v867_v50 = vadd.f32 %v866_v46, %v579_v40  ;;  %v938_v51 = vadd.f32 %v937_v47, %v587_v41  ;;  %v552_v41 = vld [vmem:[%s1996_s19 + $0x10] sm:$0xf] }
 0x15c   : > { %v623_v42 = vrot.slane %v552_v41, %v2352_v13  ;;  %v631_v43 = vrot.slane %v552_v41, %v2355_v14 }
 0x15d   : > { %v1388_v52 = vcombine.low %v865_v44, %v867_v50  ;;  %v1389_v53 = vcombine.low %v936_v45, %v938_v51  ;;  %v627_v44 = vrot.slane %v552_v41, %v2358_v15  ;;  %v635_v45 = vrot.slane %v552_v41, %v2361_v0 }
 0x15f   : > { %v1410_v55 = vrot.slane %v1388_v52, %v2373_v37  ;;  %v1417_v56 = vrot.slane %v1389_v53, %v2373_v37 }
 0x161   : > { %v1419_v57 = vcombine.low %v1410_v55, %v1417_v56 }
 0x163   : > { %v1433_v59 = vrot.slane %v1419_v57, %v2373_v37 }
 0x165   : > { %v1434_v60 = vcombine.low %v1426_v58, %v1433_v59 }
 0x167   : > { %1511 = vst [vmem:[%s2383_s28] sm:$0xff] %v1434_v60 }
 0x17a   : > { %v1006_v62 = vpop.f32.mrf.mxu0  ;;  %v1077_v63 = vpop.f32.mrf.mxu1 }
 0x17b   : > { %v1007_v8 = vadd.f32 %v1006_v62, %v591_v1  ;;  %v1078_v9 = vadd.f32 %v1077_v63, %v599_v3 }
 0x17c   : > { %v1008_v6 = vpop.f32.mrf.mxu0  ;;  %v1079_v7 = vpop.f32.mrf.mxu1 }
 0x17d   : > { %v1009_v10 = vadd.f32 %v1008_v6, %v595_v4  ;;  %v1080_v12 = vadd.f32 %v1079_v7, %v603_v5 }
 0x17f   : > { %v1435_v18 = vcombine.low %v1007_v8, %v1009_v10  ;;  %v1436_v19 = vcombine.low %v1078_v9, %v1080_v12 }
 0x181   : > { %v1445_v31 = vrot.slane %v1435_v18, %v2373_v37  ;;  %v1452_v32 = vrot.slane %v1436_v19, %v2373_v37 }
 0x183   : > { %v1467_v35 = vcombine.low %v1445_v31, %v1452_v32 }
 0x185   : > { %v1475_v38 = vrot.slane %v1467_v35, %v2373_v37 }
 0x19c   : > { %v1148_v21 = vpop.f32.mrf.mxu0  ;;  %v1219_v22 = vpop.f32.mrf.mxu1 }
 0x19d   : > { %v1149_v23 = vadd.f32 %v1148_v21, %v607_v16  ;;  %v1220_v24 = vadd.f32 %v1219_v22, %v615_v17 }
 0x19e   : > { %v1150_v25 = vpop.f32.mrf.mxu0  ;;  %v1221_v28 = vpop.f32.mrf.mxu1 }
 0x19f   : > { %v1151_v33 = vadd.f32 %v1150_v25, %v611_v2  ;;  %v1222_v34 = vadd.f32 %v1221_v28, %v619_v20 }
 0x1a1   : > { %v1437_v26 = vcombine.low %v1149_v23, %v1151_v33  ;;  %v1438_v27 = vcombine.low %v1220_v24, %v1222_v34 }
 0x1a3   : > { %v1459_v29 = vrot.slane %v1437_v26, %v2373_v37  ;;  %v1466_v30 = vrot.slane %v1438_v27, %v2373_v37 }
 0x1a5   : > { %v1468_v36 = vcombine.low %v1459_v29, %v1466_v30 }
 0x1a7   : > { %v1482_v39 = vrot.slane %v1468_v36, %v2373_v37 }
 0x1a9   : > { %v1483_v40 = vcombine.low %v1475_v38, %v1482_v39 }
 0x1ab   : > { %1512 = vst [vmem:[%s2383_s28 + $0x8] sm:$0xff] %v1483_v40 }
 0x1be   : > { %v1290_v46 = vpop.f32.mrf.mxu0  ;;  %v1361_v47 = vpop.f32.mrf.mxu1 }
 0x1bf   : > { %v1291_v50 = vadd.f32 %v1290_v46, %v623_v42  ;;  %v1362_v51 = vadd.f32 %v1361_v47, %v631_v43 }
 0x1c0   : > { %v1292_v48 = vpop.f32.mrf.mxu0  ;;  %v1363_v49 = vpop.f32.mrf.mxu1 }
 0x1c1   : > { %v1293_v52 = vadd.f32 %v1292_v48, %v627_v44  ;;  %v1364_v53 = vadd.f32 %v1363_v49, %v635_v45 }
 0x1c3   : > { %v1484_v13 = vcombine.low %v1291_v50, %v1293_v52  ;;  %v1485_v54 = vcombine.low %v1362_v51, %v1364_v53 }
 0x1c5   : > { %v1492_v14 = vrot.slane %v1484_v13, %v2373_v37  ;;  %v1499_v55 = vrot.slane %v1485_v54, %v2373_v37 }
 0x1c7   : > { %v1500_v15 = vcombine.low %v1492_v14, %v1499_v55 }
 0x1c9   : > { %v1507_v0 = vrot.slane %v1500_v15, %v2373_v37 }
 0x1cb   : > { %1517 = vst.msk [vmem:[%s2383_s28 + $0x10] sm:$0xf] %vm1515_vm0, %v1507_v0 }
 0x1cc   : > { %1767 = shalt.err (!%p1764_p3)
}
 0x1cd   : > { %s1768_s4 = scalar_lea.hbm %s1531_s10, 320  ;;  %s1772_s19 = scalar_lea.hbm %s2446_s3, 1280 }
 0x1ce   : > { %p1769_p2 = scmp.ne.s32.totalorder %s1531_s10, %s1768_s4  ;;  %p1773_p5 = scmp.lt.s32.totalorder %s1531_s10, %s2446_s3 }
 0x1cf   : > { %p1774_p7 = scmp.lt.s32.totalorder %s1772_s19, %s1768_s4 }
 0x1d0   : > { %p1770_p4 = pnand %p1769_p2, %p2456_p12 }
 0x1d1   : > { %p1775_p0 = por %p1774_p7, %p1773_p5 }
 0x1d2   : > { %p1771_p11 = pneg %p1770_p4 }
 0x1d4   : > { %p1776_p6 = pnand %p1775_p0, %p1771_p11 }
 0x1d6   : > { %1779 = shalt.err (!%p1776_p6)
}
 0x1d7   : > { %1646 = dma.vmem_to_hbm [thread:$0]  (%p2456_p12), %s1534_s5, 320, %s1531_s10, %s1519_s11  }
 0x1d8 PF: > { %p1660_p10 = scmp.ge.s32.totalorder %s1822_s15, 2  ;;  %s1545_s30 = sand.u32 1, %s1810_s12  }
 0x1d9   : > { %p2457_p8 = scmp.ne.s32.totalorder %s2451_s24, 0  ;;  %s1546_s27 = scalar_lea.sflag [#allocation4], %s1545_s30 }
 0x1db   : > { %p1656_p9 = pnand %p1660_p10, %p2457_p8 }
 0x1dd   : > { %p1657_p13 = pneg %p1656_p9 }
 0x1df   : > { %1805 = dma.done.wait (%p1657_p13), %s1546_s27, 320  }
 0x1e0   : > { %1807 = vsyncadd (%p1657_p13), %s1546_s27, 4294966976  ;;  %p19_p1 = scmp.ge.s32.totalorder %s1876_s18, 6   ;;  %s2458_s12 = smov %s1814_s13 }
 0x1e1   : > { %s2459_s13 = smov %s1818_s14  ;;  %s2460_s14 = smov %s1888_s21 }
 0x1e2   : > { %s2461_s15 = smov %s1876_s18  ;;  %21 = sbr.rel (!%p19_p1) target bundleno = 7 (0x7), region = 90 }
 0x1e7   :  { %1551 = vsyncpa [#allocation3], 1 }
 0x1e8   :  { %1553 = vsyncpa [#allocation3 + $0x1], 1 }
 0x1e9   :  { %1554 = vsyncpa [#allocation6], 1 }
 0x1ea   :  { %1556 = vsyncpa [#allocation6 + $0x1], 1 }
 0x1eb   :  { %1557 = vsyncpa [#allocation4], 1 }
 0x1ec   :  { %1559 = vsyncpa [#allocation4 + $0x1], 1 }

</bundles_post_ra>
